<compile_context>
chip_gen: v5e
topology: v5e:2x2
jax: 0.10.0
libtpu: 0.0.40
codegen_flags: <defaults>
</compile_context>

<pallas_src>
import functools

import jax
import jax.numpy as jnp
from jax import lax
from jax.experimental import pallas as pl
from jax.experimental.pallas import tpu as pltpu


# ----------------------------------------------------------------------------
# Phase 1: tiled matmul + per-channel sum / sum-of-squares accumulation.
# ----------------------------------------------------------------------------
def _matmul_stats_kernel(p_ref, w_ref, y_ref, sum_ref, sumsq_ref):
    # p_ref: [tm, Kpad] patches tile, w_ref: [Kpad, Cpad] (VMEM-resident weights)
    # y_ref: [tm, Cpad] un-normalized conv output tile (streamed out)
    # sum_ref / sumsq_ref: [1, Cpad] accumulators (resident across the grid)
    i = pl.program_id(0)

    @pl.when(i == 0)
    def _init():
        sum_ref[...] = jnp.zeros_like(sum_ref)
        sumsq_ref[...] = jnp.zeros_like(sumsq_ref)

    y = jnp.dot(p_ref[...], w_ref[...], preferred_element_type=jnp.float32)
    y_ref[...] = y
    sum_ref[...] += jnp.sum(y, axis=0, keepdims=True)
    sumsq_ref[...] += jnp.sum(y * y, axis=0, keepdims=True)


# ----------------------------------------------------------------------------
# Phase 2: BatchNorm (batch statistics, biased var, eps=1e-5) + ReLU.
# ----------------------------------------------------------------------------
def _bn_relu_kernel(y_ref, sum_ref, sumsq_ref, g_ref, b_ref, o_ref, *, m_total):
    inv_m = 1.0 / m_total
    mean = sum_ref[...] * inv_m
    var = sumsq_ref[...] * inv_m - mean * mean          # biased variance
    scale = lax.rsqrt(var + 1e-5) * g_ref[...]          # (1, Cpad)
    shift = b_ref[...] - mean * scale                   # (1, Cpad)
    o_ref[...] = jnp.maximum(y_ref[...] * scale + shift, 0.0).astype(o_ref.dtype)


# ----------------------------------------------------------------------------
# Host-side helpers.
# ----------------------------------------------------------------------------
def _round_up(x, m):
    return (x + m - 1) // m * m


def _im2col_nhwc(x_nhwc, kernel_size, stride, padding):
    """x_nhwc: [N, H, W, C] -> patches [N*OH*OW, KH*KW*C] ordered (kh, kw, ci)."""
    n, h, w, c = x_nhwc.shape
    kh = kw = kernel_size
    oh = (h + 2 * padding - kh) // stride + 1
    ow = (w + 2 * padding - kw) // stride + 1
    xp = jnp.pad(x_nhwc, ((0, 0), (padding, padding), (padding, padding), (0, 0)))
    cols = []
    for i in range(kh):
        for j in range(kw):
            cols.append(xp[:, i:i + oh * stride:stride, j:j + ow * stride:stride, :])
    patches = jnp.stack(cols, axis=3)                    # [N, OH, OW, KH*KW, C]
    patches = patches.reshape(n, oh, ow, kh * kw * c)    # (kh, kw, ci), ci fastest
    return patches.reshape(n * oh * ow, kh * kw * c), oh, ow


@functools.partial(
    jax.jit,
    static_argnames=("kernel_size", "stride", "padding", "block_m", "compute_dtype"),
)
def conv_block_forward(x_nchw, weight, bias, gamma, beta, *, kernel_size, stride,
                       padding, block_m=256, compute_dtype=jnp.float32):
    """ConvBlock forward. x_nchw: [N, Cin, H, W]; weight: [Cout, Cin, KH, KW].

    `bias` is accepted for API parity with the PyTorch module but is NOT used:
    BatchNorm with batch statistics subtracts the per-channel mean, which
    cancels any per-channel constant bias exactly.
    """
    del bias
    n, cin, h, w = x_nchw.shape
    cout = weight.shape[0]

    x_nhwc = jnp.transpose(x_nchw, (0, 2, 3, 1))
    patches, oh, ow = _im2col_nhwc(x_nhwc, kernel_size, stride, padding)  # [M, K]
    m, k = patches.shape

    k_pad = _round_up(k, 128)          # MXU contraction width / lane alignment
    c_pad = _round_up(cout, 128)       # lane-dense output stores
    m_pad = _round_up(m, block_m)
    n_tiles = m_pad // block_m

    # Zero-pad operands. Zero patch rows / K columns contribute nothing to the
    # matmul or the statistics, so divisors stay the true M.
    patches_p = (jnp.zeros((m_pad, k_pad), compute_dtype)
                 .at[:m, :k].set(patches.astype(compute_dtype)))
    w_mat = jnp.transpose(weight, (2, 3, 1, 0)).reshape(k, cout)  # (kh,kw,ci) x Cout
    w_p = (jnp.zeros((k_pad, c_pad), compute_dtype)
           .at[:k, :cout].set(w_mat.astype(compute_dtype)))
    g_p = jnp.zeros((1, c_pad), jnp.float32).at[0, :cout].set(gamma.astype(jnp.float32))
    b_p = jnp.zeros((1, c_pad), jnp.float32).at[0, :cout].set(beta.astype(jnp.float32))

    # ---- Phase 1: matmul + stats accumulation (reduction axis -> "arbitrary").
    y, ch_sum, ch_sumsq = pl.pallas_call(
        _matmul_stats_kernel,
        out_shape=(
            jax.ShapeDtypeStruct((m_pad, c_pad), jnp.float32),
            jax.ShapeDtypeStruct((1, c_pad), jnp.float32),
            jax.ShapeDtypeStruct((1, c_pad), jnp.float32),
        ),
        grid=(n_tiles,),
        in_specs=[
            pl.BlockSpec((block_m, k_pad), lambda i: (i, 0)),   # streamed patches
            pl.BlockSpec((k_pad, c_pad), lambda i: (0, 0)),     # resident weights
        ],
        out_specs=(
            pl.BlockSpec((block_m, c_pad), lambda i: (i, 0)),   # streamed y
            pl.BlockSpec((1, c_pad), lambda i: (0, 0)),         # resident sum
            pl.BlockSpec((1, c_pad), lambda i: (0, 0)),         # resident sumsq
        ),
        compiler_params=pltpu.CompilerParams(dimension_semantics=("arbitrary",)),
    )(patches_p, w_p)

    # ---- Phase 2: normalize + ReLU (embarrassingly parallel over rows).
    out = pl.pallas_call(
        functools.partial(_bn_relu_kernel, m_total=float(m)),
        out_shape=jax.ShapeDtypeStruct((m_pad, c_pad), x_nchw.dtype),
        grid=(n_tiles,),
        in_specs=[
            pl.BlockSpec((block_m, c_pad), lambda i: (i, 0)),   # streamed y
            pl.BlockSpec((1, c_pad), lambda i: (0, 0)),         # resident stats
            pl.BlockSpec((1, c_pad), lambda i: (0, 0)),
            pl.BlockSpec((1, c_pad), lambda i: (0, 0)),         # resident gamma
            pl.BlockSpec((1, c_pad), lambda i: (0, 0)),         # resident beta
        ],
        out_specs=pl.BlockSpec((block_m, c_pad), lambda i: (i, 0)),
        compiler_params=pltpu.CompilerParams(dimension_semantics=("parallel",)),
    )(y, ch_sum, ch_sumsq, g_p, b_p)

    out = out[:m, :cout].reshape(n, oh, ow, cout)
    return jnp.transpose(out, (0, 3, 1, 2))  # back to NCHW to match the module


# ----------------------------------------------------------------------------
# Parameter init matching the PyTorch module and a pure-JAX reference.
# ----------------------------------------------------------------------------
def init_conv_block_params(key, in_channels, out_channels, kernel_size):
    """xavier_normal_ conv weight, zero conv bias, BN gamma=1, BN beta=0."""
    fan_in = in_channels * kernel_size * kernel_size
    fan_out = out_channels * kernel_size * kernel_size
    std = (2.0 / (fan_in + fan_out)) ** 0.5
    weight = std * jax.random.normal(
        key, (out_channels, in_channels, kernel_size, kernel_size), dtype=jnp.float32
    )
    bias = jnp.zeros((out_channels,), jnp.float32)
    gamma = jnp.ones((out_channels,), jnp.float32)
    beta = jnp.zeros((out_channels,), jnp.float32)
    return weight, bias, gamma, beta


def _reference_forward(x, weight, bias, gamma, beta, stride, padding):
    y = lax.conv_general_dilated(
        x, weight, window_strides=(stride, stride),
        padding=((padding, padding), (padding, padding)),
        dimension_numbers=("NCHW", "OIHW", "NCHW"),
    ) + bias.reshape(1, -1, 1, 1)
    mean = jnp.mean(y, axis=(0, 2, 3), keepdims=True)
    var = jnp.mean((y - mean) ** 2, axis=(0, 2, 3), keepdims=True)
    y = (y - mean) * lax.rsqrt(var + 1e-5)
    y = y * gamma.reshape(1, -1, 1, 1) + beta.reshape(1, -1, 1, 1)
    return jnp.maximum(y, 0.0)


if __name__ == "__main__":
    # Small shapes consistent with the module.
    N, CIN, H, W = 2, 4, 16, 16
    COUT, KSIZE, STRIDE, PAD = 8, 3, 1, 1

    key = jax.random.PRNGKey(0)
    k_x, k_w = jax.random.split(key)
    x = jax.random.normal(k_x, (N, CIN, H, W), dtype=jnp.float32)
    weight, bias, gamma, beta = init_conv_block_params(k_w, CIN, COUT, KSIZE)

    ref = _reference_forward(x, weight, bias, gamma, beta, STRIDE, PAD)

    # f32 MXU operands (tight numerics check). M=512 with block_m=256 -> 2-step
    # grid, exercising the accumulator / pipelined path.
    out_f32 = conv_block_forward(
        x, weight, bias, gamma, beta,
        kernel_size=KSIZE, stride=STRIDE, padding=PAD,
        block_m=256, compute_dtype=jnp.float32,
    )
    out_f32 = jax.block_until_ready(out_f32)
    assert out_f32.shape == ref.shape == (N, COUT, H, W)
    assert jnp.allclose(out_f32, ref, atol=1e-4, rtol=1e-4), "f32 mismatch vs reference"

    # bf16 MXU operands with f32 accumulation + f32 BN math (v6e/v7x fast path).
    out_bf16 = conv_block_forward(
        x, weight, bias, gamma, beta,
        kernel_size=KSIZE, stride=STRIDE, padding=PAD,
        block_m=256, compute_dtype=jnp.bfloat16,
    )
    out_bf16 = jax.block_until_ready(out_bf16)
    assert jnp.allclose(out_bf16, ref, atol=5e-2, rtol=5e-2), "bf16 mismatch vs reference"

    print("KERNEL_OK")
</pallas_src>

<mosaic_0001>
module attributes {stable_mosaic.version = 11 : i64} {
  func.func @_matmul_stats_kernel(%arg0: i32, %arg1: memref<256x128xf32, #tpu.memory_space<vmem>>, %arg2: memref<128x128xf32, #tpu.memory_space<vmem>>, %arg3: memref<256x128xf32, #tpu.memory_space<vmem>>, %arg4: memref<1x128xf32, #tpu.memory_space<vmem>>, %arg5: memref<1x128xf32, #tpu.memory_space<vmem>>) attributes {dimension_semantics = [#tpu.dimension_semantics<arbitrary>], iteration_bounds = array<i64: 2>, scalar_prefetch = 0 : i64, scratch_operands = 0 : i64, tpu.core_type = #tpu.core_type<tc>, window_params = [{transform_indices = @transform_0, window_bounds = array<i64: 256, 128>}, {pipeline_mode = #tpu.pipeline_mode<synchronous>, transform_indices = @transform_1, window_bounds = array<i64: 128, 128>}, {transform_indices = @transform_2, window_bounds = array<i64: 256, 128>}, {pipeline_mode = #tpu.pipeline_mode<synchronous>, transform_indices = @transform_3, window_bounds = array<i64: 1, 128>}, {pipeline_mode = #tpu.pipeline_mode<synchronous>, transform_indices = @transform_4, window_bounds = array<i64: 1, 128>}]} {
    %c0_i32 = arith.constant 0 : i32
    %0 = arith.cmpi eq, %arg0, %c0_i32 : i32
    %1 = arith.extui %0 : i1 to i32
    %c0_i32_0 = arith.constant 0 : i32
    %2 = arith.cmpi ne, %1, %c0_i32_0 : i32
    scf.if %2 {
      %cst_16 = arith.constant 0.000000e+00 : f32
      %18 = vector.broadcast %cst_16 : f32 to vector<1x128xf32>
      %c0_17 = arith.constant 0 : index
      %c0_18 = arith.constant 0 : index
      %19 = vector.load %arg4[%c0_17, %c0_18] : memref<1x128xf32, #tpu.memory_space<vmem>>, vector<1x128xf32>
      tpu.vector_store %arg4[%c0_17, %c0_18], %18 {strides = array<i32>} : memref<1x128xf32, #tpu.memory_space<vmem>>, vector<1x128xf32>,
      %cst_19 = arith.constant 0.000000e+00 : f32
      %20 = vector.broadcast %cst_19 : f32 to vector<1x128xf32>
      %c0_20 = arith.constant 0 : index
      %c0_21 = arith.constant 0 : index
      %21 = vector.load %arg5[%c0_20, %c0_21] : memref<1x128xf32, #tpu.memory_space<vmem>>, vector<1x128xf32>
      tpu.vector_store %arg5[%c0_20, %c0_21], %20 {strides = array<i32>} : memref<1x128xf32, #tpu.memory_space<vmem>>, vector<1x128xf32>,
    } else {
    }
    %c0 = arith.constant 0 : index
    %c0_1 = arith.constant 0 : index
    %3 = vector.load %arg1[%c0, %c0_1] : memref<256x128xf32, #tpu.memory_space<vmem>>, vector<256x128xf32>
    %c0_2 = arith.constant 0 : index
    %c0_3 = arith.constant 0 : index
    %4 = vector.load %arg2[%c0_2, %c0_3] : memref<128x128xf32, #tpu.memory_space<vmem>>, vector<128x128xf32>
    %cst = arith.constant dense<0.000000e+00> : vector<256x128xf32>
    %5 = tpu.matmul %3, %4, %cst {dimension_numbers = #tpu.dot_dimension_numbers<[1], [0], [0], [1], [0, 0, 1, 1], [], []>} : vector<256x128xf32>, vector<128x128xf32>, vector<256x128xf32> -> vector<256x128xf32>
    %c0_4 = arith.constant 0 : index
    %c0_5 = arith.constant 0 : index
    %6 = vector.load %arg3[%c0_4, %c0_5] : memref<256x128xf32, #tpu.memory_space<vmem>>, vector<256x128xf32>
    tpu.vector_store %arg3[%c0_4, %c0_5], %5 {strides = array<i32>} : memref<256x128xf32, #tpu.memory_space<vmem>>, vector<256x128xf32>,
    %c0_6 = arith.constant 0 : index
    %c0_7 = arith.constant 0 : index
    %7 = vector.load %arg4[%c0_6, %c0_7] : memref<1x128xf32, #tpu.memory_space<vmem>>, vector<1x128xf32>
    %cst_8 = arith.constant dense<0.000000e+00> : vector<128xf32>
    %8 = vector.multi_reduction <add>, %5, %cst_8 [0] : vector<256x128xf32> to vector<128xf32>
    %9 = vector.shape_cast %8 : vector<128xf32> to vector<1x128xf32>
    %10 = arith.addf %7, %9 : vector<1x128xf32>
    %c0_9 = arith.constant 0 : index
    %c0_10 = arith.constant 0 : index
    %11 = vector.load %arg4[%c0_9, %c0_10] : memref<1x128xf32, #tpu.memory_space<vmem>>, vector<1x128xf32>
    tpu.vector_store %arg4[%c0_9, %c0_10], %10 {strides = array<i32>} : memref<1x128xf32, #tpu.memory_space<vmem>>, vector<1x128xf32>,
    %c0_11 = arith.constant 0 : index
    %c0_12 = arith.constant 0 : index
    %12 = vector.load %arg5[%c0_11, %c0_12] : memref<1x128xf32, #tpu.memory_space<vmem>>, vector<1x128xf32>
    %13 = arith.mulf %5, %5 : vector<256x128xf32>
    %cst_13 = arith.constant dense<0.000000e+00> : vector<128xf32>
    %14 = vector.multi_reduction <add>, %13, %cst_13 [0] : vector<256x128xf32> to vector<128xf32>
    %15 = vector.shape_cast %14 : vector<128xf32> to vector<1x128xf32>
    %16 = arith.addf %12, %15 : vector<1x128xf32>
    %c0_14 = arith.constant 0 : index
    %c0_15 = arith.constant 0 : index
    %17 = vector.load %arg5[%c0_14, %c0_15] : memref<1x128xf32, #tpu.memory_space<vmem>>, vector<1x128xf32>
    tpu.vector_store %arg5[%c0_14, %c0_15], %16 {strides = array<i32>} : memref<1x128xf32, #tpu.memory_space<vmem>>, vector<1x128xf32>,
    return
  }
  func.func @transform_0(%arg0: i32) -> (i32, i32) {
    %c0_i32 = arith.constant 0 : i32
    %c0_i32_0 = arith.constant 0 : i32
    return %arg0, %c0_i32 : i32, i32
  }
  func.func @transform_1(%arg0: i32) -> (i32, i32) {
    %c0_i32 = arith.constant 0 : i32
    %c0_i32_0 = arith.constant 0 : i32
    %c0_i32_1 = arith.constant 0 : i32
    return %c0_i32, %c0_i32_0 : i32, i32
  }
  func.func @transform_2(%arg0: i32) -> (i32, i32) {
    %c0_i32 = arith.constant 0 : i32
    %c0_i32_0 = arith.constant 0 : i32
    return %arg0, %c0_i32 : i32, i32
  }
  func.func @transform_3(%arg0: i32) -> (i32, i32) {
    %c0_i32 = arith.constant 0 : i32
    %c0_i32_0 = arith.constant 0 : i32
    %c0_i32_1 = arith.constant 0 : i32
    return %c0_i32, %c0_i32_0 : i32, i32
  }
  func.func @transform_4(%arg0: i32) -> (i32, i32) {
    %c0_i32 = arith.constant 0 : i32
    %c0_i32_0 = arith.constant 0 : i32
    %c0_i32_1 = arith.constant 0 : i32
    return %c0_i32, %c0_i32_0 : i32, i32
  }
}

module attributes {stable_mosaic.version = 11 : i64} {
  func.func @_bn_relu_kernel(%arg0: i32, %arg1: memref<256x128xf32, #tpu.memory_space<vmem>>, %arg2: memref<1x128xf32, #tpu.memory_space<vmem>>, %arg3: memref<1x128xf32, #tpu.memory_space<vmem>>, %arg4: memref<1x128xf32, #tpu.memory_space<vmem>>, %arg5: memref<1x128xf32, #tpu.memory_space<vmem>>, %arg6: memref<256x128xf32, #tpu.memory_space<vmem>>) attributes {dimension_semantics = [#tpu.dimension_semantics<parallel>], iteration_bounds = array<i64: 2>, scalar_prefetch = 0 : i64, scratch_operands = 0 : i64, tpu.core_type = #tpu.core_type<tc>, window_params = [{transform_indices = @transform_0, window_bounds = array<i64: 256, 128>}, {pipeline_mode = #tpu.pipeline_mode<synchronous>, transform_indices = @transform_1, window_bounds = array<i64: 1, 128>}, {pipeline_mode = #tpu.pipeline_mode<synchronous>, transform_indices = @transform_2, window_bounds = array<i64: 1, 128>}, {pipeline_mode = #tpu.pipeline_mode<synchronous>, transform_indices = @transform_3, window_bounds = array<i64: 1, 128>}, {pipeline_mode = #tpu.pipeline_mode<synchronous>, transform_indices = @transform_4, window_bounds = array<i64: 1, 128>}, {transform_indices = @transform_5, window_bounds = array<i64: 256, 128>}]} {
    %c0 = arith.constant 0 : index
    %c0_0 = arith.constant 0 : index
    %0 = vector.load %arg2[%c0, %c0_0] : memref<1x128xf32, #tpu.memory_space<vmem>>, vector<1x128xf32>
    %cst = arith.constant 0.001953125 : f32
    %1 = vector.broadcast %cst : f32 to vector<1x128xf32>
    %2 = arith.mulf %0, %1 : vector<1x128xf32>
    %c0_1 = arith.constant 0 : index
    %c0_2 = arith.constant 0 : index
    %3 = vector.load %arg3[%c0_1, %c0_2] : memref<1x128xf32, #tpu.memory_space<vmem>>, vector<1x128xf32>
    %cst_3 = arith.constant 0.001953125 : f32
    %4 = vector.broadcast %cst_3 : f32 to vector<1x128xf32>
    %5 = arith.mulf %3, %4 : vector<1x128xf32>
    %6 = arith.mulf %2, %2 : vector<1x128xf32>
    %7 = arith.subf %5, %6 : vector<1x128xf32>
    %cst_4 = arith.constant 9.99999974E-6 : f32
    %8 = vector.broadcast %cst_4 : f32 to vector<1x128xf32>
    %9 = arith.addf %7, %8 : vector<1x128xf32>
    %10 = math.rsqrt %9 : vector<1x128xf32>
    %c0_5 = arith.constant 0 : index
    %c0_6 = arith.constant 0 : index
    %11 = vector.load %arg4[%c0_5, %c0_6] : memref<1x128xf32, #tpu.memory_space<vmem>>, vector<1x128xf32>
    %12 = arith.mulf %10, %11 : vector<1x128xf32>
    %c0_7 = arith.constant 0 : index
    %c0_8 = arith.constant 0 : index
    %13 = vector.load %arg5[%c0_7, %c0_8] : memref<1x128xf32, #tpu.memory_space<vmem>>, vector<1x128xf32>
    %14 = arith.mulf %2, %12 : vector<1x128xf32>
    %15 = arith.subf %13, %14 : vector<1x128xf32>
    %c0_9 = arith.constant 0 : index
    %c0_10 = arith.constant 0 : index
    %16 = vector.load %arg1[%c0_9, %c0_10] : memref<256x128xf32, #tpu.memory_space<vmem>>, vector<256x128xf32>
    %17 = vector.broadcast %12 : vector<1x128xf32> to vector<256x128xf32>
    %18 = arith.mulf %16, %17 : vector<256x128xf32>
    %19 = vector.broadcast %15 : vector<1x128xf32> to vector<256x128xf32>
    %20 = arith.addf %18, %19 : vector<256x128xf32>
    %cst_11 = arith.constant 0.000000e+00 : f32
    %21 = vector.broadcast %cst_11 : f32 to vector<256x128xf32>
    %22 = arith.maximumf %20, %21 : vector<256x128xf32>
    %c0_12 = arith.constant 0 : index
    %c0_13 = arith.constant 0 : index
    %23 = vector.load %arg6[%c0_12, %c0_13] : memref<256x128xf32, #tpu.memory_space<vmem>>, vector<256x128xf32>
    tpu.vector_store %arg6[%c0_12, %c0_13], %22 {strides = array<i32>} : memref<256x128xf32, #tpu.memory_space<vmem>>, vector<256x128xf32>,
    return
  }
  func.func @transform_0(%arg0: i32) -> (i32, i32) {
    %c0_i32 = arith.constant 0 : i32
    %c0_i32_0 = arith.constant 0 : i32
    return %arg0, %c0_i32 : i32, i32
  }
  func.func @transform_1(%arg0: i32) -> (i32, i32) {
    %c0_i32 = arith.constant 0 : i32
    %c0_i32_0 = arith.constant 0 : i32
    %c0_i32_1 = arith.constant 0 : i32
    return %c0_i32, %c0_i32_0 : i32, i32
  }
  func.func @transform_2(%arg0: i32) -> (i32, i32) {
    %c0_i32 = arith.constant 0 : i32
    %c0_i32_0 = arith.constant 0 : i32
    %c0_i32_1 = arith.constant 0 : i32
    return %c0_i32, %c0_i32_0 : i32, i32
  }
  func.func @transform_3(%arg0: i32) -> (i32, i32) {
    %c0_i32 = arith.constant 0 : i32
    %c0_i32_0 = arith.constant 0 : i32
    %c0_i32_1 = arith.constant 0 : i32
    return %c0_i32, %c0_i32_0 : i32, i32
  }
  func.func @transform_4(%arg0: i32) -> (i32, i32) {
    %c0_i32 = arith.constant 0 : i32
    %c0_i32_0 = arith.constant 0 : i32
    %c0_i32_1 = arith.constant 0 : i32
    return %c0_i32, %c0_i32_0 : i32, i32
  }
  func.func @transform_5(%arg0: i32) -> (i32, i32) {
    %c0_i32 = arith.constant 0 : i32
    %c0_i32_0 = arith.constant 0 : i32
    return %arg0, %c0_i32 : i32, i32
  }
}

</mosaic_0001>

<bundles_post_ra>
// kernel: conv_block_forward.2
= control target key start
LH: loop header
LB: loop body
LE: loop exit
PB: predicated region body
PF: predicated region fallthrough
CT: control target
= control target key end

     0   :  { %s678_s15 = smov 0   ;;  %s937_s0 = inlined_call_operand.vmem [shape: f32[512,128], index: 0, kind: input, shape index: {}]   ;;  %s938_s1 = inlined_call_operand.vmem [shape: f32[128,128], index: 1, kind: input, shape index: {}]   ;;  %s939_s2 = inlined_call_operand.vmem [shape: f32[512,128], index: 2, kind: output, shape index: {0}]   ;;  %s940_s3 = inlined_call_operand.vmem [shape: f32[1,128], index: 3, kind: output, shape index: {1}]   ;;  %s941_s4 = inlined_call_operand.vmem [shape: f32[1,128], index: 4, kind: output, shape index: {2}]  }
   0x1 LB: > { %s575_s16 = sadd.s32 4294967295, %s650_s15   ;;  %p579_p0 = scmp.ge.s32.totalorder %s650_s15, 1  ;;  %s650_s15 = sphi %s678_s15, %s15_s15  }
   0x2   : > { %p158_p1 = scmp.lt.s32.totalorder %s650_s15, 3 }
   0x4   : > { %p159_p2 = pnand %p579_p0, %p158_p1 }
   0x5   : > { %s580_s17 = sshll.u32 (!%p159_p2), %s575_s16, 5  ;;  %p584_p4 = scmp.ne.s32.totalorder (!%p159_p2), %s575_s16, 0 }
   0x6   : > { %162 = sbr.rel (%p159_p2) target bundleno = 300 (0x12c), region = 28  ;;  %p185_p3 = scmp.lt.s32.totalorder (!%p159_p2), %s580_s17, 63 }
   0xb   : > { %s943_s17 = smov (!%p185_p3, %s580_s17), 63  ;;  %199 = sbr.rel (%p584_p4) target bundleno = 19 (0x13), region = 32 }
   0xc   : > { %s581_s18 = sshll.u32 %s943_s17, 3 }
   0xd   : > { %s689_s21 = scalar_lea.vmem %s937_s0, %s581_s18  ;;  %s694_s24 = scalar_lea.vmem %s939_s2, %s581_s18 }
  0x10   : > { %v652_v0 = vmov 0.0  }
  0x11   : > { %200 = vst [vmem:[%s940_s3] sm:$0x1] %v652_v0 }
  0x12   : > { %201 = vst [vmem:[%s941_s4] sm:$0x1] %v652_v0 }
  0x13 PF: > { %v249_v1 = vld [vmem:[%s938_s1 + $0x78] sm:$0xff]  ;;  %v248_v2 = vld [vmem:[%s938_s1 + $0x70] sm:$0xff]  ;;  %v247_v3 = vld [vmem:[%s938_s1 + $0x68] sm:$0xff] }
  0x14   : > { %250 = vmatpush.msra.mxu0 %v249_v1  ;;  %587 = vmatpush.msra.mxu1 %v249_v1  ;;  %v246_v4 = vld [vmem:[%s938_s1 + $0x60] sm:$0xff]  ;;  %v245_v5 = vld [vmem:[%s938_s1 + $0x58] sm:$0xff]  ;;  %v244_v6 = vld [vmem:[%s938_s1 + $0x50] sm:$0xff] }
  0x15   : > { %588 = vmatpush.msra.mxu2 %v249_v1  ;;  %589 = vmatpush.msra.mxu3 %v249_v1  ;;  %v243_v7 = vld [vmem:[%s938_s1 + $0x48] sm:$0xff]  ;;  %v242_v8 = vld [vmem:[%s938_s1 + $0x40] sm:$0xff]  ;;  %v241_v9 = vld [vmem:[%s938_s1 + $0x38] sm:$0xff] }
  0x16   : > { %251 = vmatpush.msra.mxu0 %v248_v2  ;;  %590 = vmatpush.msra.mxu1 %v248_v2  ;;  %v240_v10 = vld [vmem:[%s938_s1 + $0x30] sm:$0xff]  ;;  %v239_v11 = vld [vmem:[%s938_s1 + $0x28] sm:$0xff]  ;;  %v238_v12 = vld [vmem:[%s938_s1 + $0x20] sm:$0xff] }
  0x17   : > { %591 = vmatpush.msra.mxu2 %v248_v2  ;;  %592 = vmatpush.msra.mxu3 %v248_v2  ;;  %v237_v13 = vld [vmem:[%s938_s1 + $0x18] sm:$0xff]  ;;  %v236_v14 = vld [vmem:[%s938_s1 + $0x10] sm:$0xff]  ;;  %v235_v15 = vld [vmem:[%s938_s1 + $0x8] sm:$0xff] }
  0x18   : > { %252 = vmatpush.msra.mxu0 %v247_v3  ;;  %593 = vmatpush.msra.mxu1 %v247_v3  ;;  %v234_v16 = vld [vmem:[%s938_s1] sm:$0xff]  ;;  %v203_v20 = vld [vmem:[%s689_s21 + $0x8] sm:$0xff]  ;;  %v204_v24 = vld [vmem:[%s689_s21 + $0x10] sm:$0xff] }
  0x19   : > { %594 = vmatpush.msra.mxu2 %v247_v3  ;;  %595 = vmatpush.msra.mxu3 %v247_v3  ;;  %v202_v17 = vld [vmem:[%s689_s21] sm:$0xff]  ;;  %v211_v21 = vld [vmem:[%s689_s21 + $0x48] sm:$0xff]  ;;  %v212_v25 = vld [vmem:[%s689_s21 + $0x50] sm:$0xff] }
  0x1a   : > { %253 = vmatpush.msra.mxu0 %v246_v4  ;;  %596 = vmatpush.msra.mxu1 %v246_v4  ;;  %v210_v18 = vld [vmem:[%s689_s21 + $0x40] sm:$0xff]  ;;  %v219_v22 = vld [vmem:[%s689_s21 + $0x88] sm:$0xff]  ;;  %v220_v26 = vld [vmem:[%s689_s21 + $0x90] sm:$0xff] }
  0x1b   : > { %597 = vmatpush.msra.mxu2 %v246_v4  ;;  %598 = vmatpush.msra.mxu3 %v246_v4  ;;  %v218_v19 = vld [vmem:[%s689_s21 + $0x80] sm:$0xff]  ;;  %v227_v27 = vld [vmem:[%s689_s21 + $0xc8] sm:$0xff]  ;;  %v205_v28 = vld [vmem:[%s689_s21 + $0x18] sm:$0xff] }
  0x1c   : > { %254 = vmatpush.msra.mxu0 %v245_v5  ;;  %599 = vmatpush.msra.mxu1 %v245_v5  ;;  %v226_v23 = vld [vmem:[%s689_s21 + $0xc0] sm:$0xff]  ;;  %v213_v29 = vld [vmem:[%s689_s21 + $0x58] sm:$0xff]  ;;  %v228_v31 = vld [vmem:[%s689_s21 + $0xd0] sm:$0xff] }
  0x1d   : > { %600 = vmatpush.msra.mxu2 %v245_v5  ;;  %601 = vmatpush.msra.mxu3 %v245_v5  ;;  %v221_v30 = vld [vmem:[%s689_s21 + $0x98] sm:$0xff]  ;;  %v206_v32 = vld [vmem:[%s689_s21 + $0x20] sm:$0xff]  ;;  %v207_v36 = vld [vmem:[%s689_s21 + $0x28] sm:$0xff] }
  0x1e   : > { %255 = vmatpush.msra.mxu0 %v244_v6  ;;  %602 = vmatpush.msra.mxu1 %v244_v6  ;;  %v214_v33 = vld [vmem:[%s689_s21 + $0x60] sm:$0xff]  ;;  %v229_v34 = vld [vmem:[%s689_s21 + $0xd8] sm:$0xff]  ;;  %v215_v37 = vld [vmem:[%s689_s21 + $0x68] sm:$0xff] }
  0x1f   : > { %603 = vmatpush.msra.mxu2 %v244_v6  ;;  %604 = vmatpush.msra.mxu3 %v244_v6  ;;  %v222_v35 = vld [vmem:[%s689_s21 + $0xa0] sm:$0xff]  ;;  %v223_v39 = vld [vmem:[%s689_s21 + $0xa8] sm:$0xff]  ;;  %v208_v40 = vld [vmem:[%s689_s21 + $0x30] sm:$0xff] }
  0x20   : > { %256 = vmatpush.msra.mxu0 %v243_v7  ;;  %605 = vmatpush.msra.mxu1 %v243_v7  ;;  %v230_v38 = vld [vmem:[%s689_s21 + $0xe0] sm:$0xff]  ;;  %v216_v41 = vld [vmem:[%s689_s21 + $0x70] sm:$0xff]  ;;  %v231_v42 = vld [vmem:[%s689_s21 + $0xe8] sm:$0xff] }
  0x21   : > { %606 = vmatpush.msra.mxu2 %v243_v7  ;;  %607 = vmatpush.msra.mxu3 %v243_v7  ;;  %v224_v43 = vld [vmem:[%s689_s21 + $0xb0] sm:$0xff]  ;;  %v209_v44 = vld [vmem:[%s689_s21 + $0x38] sm:$0xff] }
  0x22   : > { %257 = vmatpush.msra.mxu0 %v242_v8  ;;  %608 = vmatpush.msra.mxu1 %v242_v8  ;;  %v217_v45 = vld [vmem:[%s689_s21 + $0x78] sm:$0xff]  ;;  %v232_v46 = vld [vmem:[%s689_s21 + $0xf0] sm:$0xff] }
  0x23   : > { %609 = vmatpush.msra.mxu2 %v242_v8  ;;  %610 = vmatpush.msra.mxu3 %v242_v8  ;;  %v225_v47 = vld [vmem:[%s689_s21 + $0xb8] sm:$0xff] }
  0x24   : > { %258 = vmatpush.msra.mxu0 %v241_v9  ;;  %611 = vmatpush.msra.mxu1 %v241_v9  ;;  %v233_v48 = vld [vmem:[%s689_s21 + $0xf8] sm:$0xff] }
  0x25   : > { %612 = vmatpush.msra.mxu2 %v241_v9  ;;  %613 = vmatpush.msra.mxu3 %v241_v9 }
  0x26   : > { %259 = vmatpush.msra.mxu0 %v240_v10  ;;  %614 = vmatpush.msra.mxu1 %v240_v10 }
  0x27   : > { %615 = vmatpush.msra.mxu2 %v240_v10  ;;  %616 = vmatpush.msra.mxu3 %v240_v10 }
  0x28   : > { %260 = vmatpush.msra.mxu0 %v239_v11  ;;  %617 = vmatpush.msra.mxu1 %v239_v11 }
  0x29   : > { %618 = vmatpush.msra.mxu2 %v239_v11  ;;  %619 = vmatpush.msra.mxu3 %v239_v11 }
  0x2a   : > { %261 = vmatpush.msra.mxu0 %v238_v12  ;;  %620 = vmatpush.msra.mxu1 %v238_v12 }
  0x2b   : > { %621 = vmatpush.msra.mxu2 %v238_v12  ;;  %622 = vmatpush.msra.mxu3 %v238_v12 }
  0x2c   : > { %262 = vmatpush.msra.mxu0 %v237_v13  ;;  %623 = vmatpush.msra.mxu1 %v237_v13 }
  0x2d   : > { %624 = vmatpush.msra.mxu2 %v237_v13  ;;  %625 = vmatpush.msra.mxu3 %v237_v13 }
  0x2e   : > { %263 = vmatpush.msra.mxu0 %v236_v14  ;;  %626 = vmatpush.msra.mxu1 %v236_v14 }
  0x2f   : > { %627 = vmatpush.msra.mxu2 %v236_v14  ;;  %628 = vmatpush.msra.mxu3 %v236_v14 }
  0x30   : > { %264 = vmatpush.msra.mxu0 %v235_v15  ;;  %629 = vmatpush.msra.mxu1 %v235_v15 }
  0x31   : > { %630 = vmatpush.msra.mxu2 %v235_v15  ;;  %631 = vmatpush.msra.mxu3 %v235_v15 }
  0x32   : > { %265 = vmatpush.msra.mxu0 %v234_v16  ;;  %632 = vmatpush.msra.mxu1 %v234_v16 }
  0x33   : > { %266 = vmatmul.f32.vlgmr.msra.gmra.mxu0 %v202_v17  ;;  %290 = vmatmul.f32.vlgmr.msra.gmra.mxu1 %v210_v18 }
  0x34   : > { %633 = vmatpush.msra.mxu2 %v234_v16  ;;  %634 = vmatpush.msra.mxu3 %v234_v16 }
  0x35   : > { %314 = vmatmul.f32.vlgmr.msra.gmra.mxu2 %v218_v19  ;;  %338 = vmatmul.f32.vlgmr.msra.gmra.mxu3 %v226_v23 }
  0x3b   : > { %269 = vmatmul.f32.gmra.mxu0 %v203_v20  ;;  %293 = vmatmul.f32.gmra.mxu1 %v211_v21 }
  0x3d   : > { %317 = vmatmul.f32.gmra.mxu2 %v219_v22  ;;  %341 = vmatmul.f32.gmra.mxu3 %v227_v27 }
  0x43   : > { %272 = vmatmul.f32.gmra.mxu0 %v204_v24  ;;  %296 = vmatmul.f32.gmra.mxu1 %v212_v25 }
  0x45   : > { %320 = vmatmul.f32.gmra.mxu2 %v220_v26  ;;  %344 = vmatmul.f32.gmra.mxu3 %v228_v31 }
  0x4b   : > { %275 = vmatmul.f32.gmra.mxu0 %v205_v28  ;;  %299 = vmatmul.f32.gmra.mxu1 %v213_v29 }
  0x4d   : > { %323 = vmatmul.f32.gmra.mxu2 %v221_v30  ;;  %347 = vmatmul.f32.gmra.mxu3 %v229_v34 }
  0x53   : > { %278 = vmatmul.f32.gmra.mxu0 %v206_v32  ;;  %302 = vmatmul.f32.gmra.mxu1 %v214_v33 }
  0x55   : > { %326 = vmatmul.f32.gmra.mxu2 %v222_v35  ;;  %350 = vmatmul.f32.gmra.mxu3 %v230_v38 }
  0x5b   : > { %281 = vmatmul.f32.gmra.mxu0 %v207_v36  ;;  %305 = vmatmul.f32.gmra.mxu1 %v215_v37 }
  0x5d   : > { %329 = vmatmul.f32.gmra.mxu2 %v223_v39  ;;  %353 = vmatmul.f32.gmra.mxu3 %v231_v42 }
  0x63   : > { %284 = vmatmul.f32.gmra.mxu0 %v208_v40  ;;  %308 = vmatmul.f32.gmra.mxu1 %v216_v41 }
  0x65   : > { %332 = vmatmul.f32.gmra.mxu2 %v224_v43  ;;  %356 = vmatmul.f32.gmra.mxu3 %v232_v46 }
  0x6b   : > { %287 = vmatmul.f32.gmra.mxu0 %v209_v44  ;;  %311 = vmatmul.f32.gmra.mxu1 %v217_v45 }
  0x6d   : > { %335 = vmatmul.f32.gmra.mxu2 %v225_v47  ;;  %359 = vmatmul.f32.gmra.mxu3 %v233_v48 }
  0xb0   : > { %v267_v49 = vpop.f32.mrf.mxu0  ;;  %v782_v50 = vpop.f32.mrf.mxu1 }
  0xb1   : > { %363 = vst [vmem:[%s694_s24] sm:$0xff] %v267_v49  ;;  %v436_v7 = vmul.f32 %v267_v49, %v267_v49  ;;  %v444_v35 = vmul.f32 %v782_v50, %v782_v50 }
  0xb2   : > { %371 = vst [vmem:[%s694_s24 + $0x40] sm:$0xff] %v782_v50 }
  0xb8   : > { %v270_v51 = vpop.f32.mrf.mxu0  ;;  %v787_v52 = vpop.f32.mrf.mxu1 }
  0xb9   : > { %364 = vst [vmem:[%s694_s24 + $0x8] sm:$0xff] %v270_v51  ;;  %v790_v53 = vpop.f32.mrf.mxu2  ;;  %v801_v57 = vpop.f32.mrf.mxu3  ;;  %v437_v6 = vmul.f32 %v270_v51, %v270_v51  ;;  %v396_v8 = vadd.f32 %v270_v51, %v267_v49  ;;  %v445_v38 = vmul.f32 %v787_v52, %v787_v52 }
  0xba   : > { %372 = vst [vmem:[%s694_s24 + $0x48] sm:$0xff] %v787_v52 }
  0xbb   : > { %379 = vst [vmem:[%s694_s24 + $0x80] sm:$0xff] %v790_v53  ;;  %v468_v10 = vadd.f32 %v437_v6, %v436_v7 }
  0xbc   : > { %387 = vst [vmem:[%s694_s24 + $0xc0] sm:$0xff] %v801_v57 }
  0xc0   : > { %v273_v54 = vpop.f32.mrf.mxu0  ;;  %v796_v55 = vpop.f32.mrf.mxu1 }
  0xc1   : > { %365 = vst [vmem:[%s694_s24 + $0x10] sm:$0xff] %v273_v54  ;;  %v799_v56 = vpop.f32.mrf.mxu2  ;;  %v814_v61 = vpop.f32.mrf.mxu3  ;;  %v438_v9 = vmul.f32 %v273_v54, %v273_v54  ;;  %v397_v11 = vadd.f32 %v396_v8, %v273_v54  ;;  %v446_v41 = vmul.f32 %v796_v55, %v796_v55 }
  0xc2   : > { %373 = vst [vmem:[%s694_s24 + $0x50] sm:$0xff] %v796_v55 }
  0xc3   : > { %380 = vst [vmem:[%s694_s24 + $0x88] sm:$0xff] %v799_v56  ;;  %v469_v15 = vadd.f32 %v468_v10, %v438_v9  ;;  %v452_v9 = vmul.f32 %v790_v53, %v790_v53 }
  0xc4   : > { %388 = vst [vmem:[%s694_s24 + $0xc8] sm:$0xff] %v814_v61 }
  0xc8   : > { %v276_v58 = vpop.f32.mrf.mxu0  ;;  %v809_v59 = vpop.f32.mrf.mxu1 }
  0xc9   : > { %366 = vst [vmem:[%s694_s24 + $0x18] sm:$0xff] %v276_v58  ;;  %v812_v60 = vpop.f32.mrf.mxu2  ;;  %v827_v1 = vpop.f32.mrf.mxu3  ;;  %v439_v12 = vmul.f32 %v276_v58, %v276_v58  ;;  %v398_v16 = vadd.f32 %v397_v11, %v276_v58  ;;  %v447_v44 = vmul.f32 %v809_v59, %v809_v59  ;;  %v453_v11 = vmul.f32 %v799_v56, %v799_v56 }
  0xca   : > { %374 = vst [vmem:[%s694_s24 + $0x58] sm:$0xff] %v809_v59 }
  0xcb   : > { %381 = vst [vmem:[%s694_s24 + $0x90] sm:$0xff] %v812_v60  ;;  %v470_v20 = vadd.f32 %v469_v15, %v439_v12 }
  0xcc   : > { %389 = vst [vmem:[%s694_s24 + $0xd0] sm:$0xff] %v827_v1 }
  0xd0   : > { %v279_v62 = vpop.f32.mrf.mxu0  ;;  %v822_v63 = vpop.f32.mrf.mxu1 }
  0xd1   : > { %367 = vst [vmem:[%s694_s24 + $0x20] sm:$0xff] %v279_v62  ;;  %v825_v0 = vpop.f32.mrf.mxu2  ;;  %v840_v5 = vpop.f32.mrf.mxu3  ;;  %v440_v17 = vmul.f32 %v279_v62, %v279_v62  ;;  %v399_v21 = vadd.f32 %v398_v16, %v279_v62  ;;  %v448_v49 = vmul.f32 %v822_v63, %v822_v63 }
  0xd2   : > { %375 = vst [vmem:[%s694_s24 + $0x60] sm:$0xff] %v822_v63  ;;  %v455_v16 = vmul.f32 %v825_v0, %v825_v0 }
  0xd3   : > { %382 = vst [vmem:[%s694_s24 + $0x98] sm:$0xff] %v825_v0  ;;  %v471_v23 = vadd.f32 %v470_v20, %v440_v17 }
  0xd4   : > { %390 = vst [vmem:[%s694_s24 + $0xd8] sm:$0xff] %v840_v5 }
  0xd8   : > { %v282_v2 = vpop.f32.mrf.mxu0  ;;  %v835_v3 = vpop.f32.mrf.mxu1 }
  0xd9   : > { %368 = vst [vmem:[%s694_s24 + $0x28] sm:$0xff] %v282_v2  ;;  %v838_v4 = vpop.f32.mrf.mxu2  ;;  %v851_v19 = vpop.f32.mrf.mxu3  ;;  %v441_v22 = vmul.f32 %v282_v2, %v282_v2  ;;  %v400_v24 = vadd.f32 %v399_v21, %v282_v2  ;;  %v449_v54 = vmul.f32 %v835_v3, %v835_v3 }
  0xda   : > { %376 = vst [vmem:[%s694_s24 + $0x68] sm:$0xff] %v835_v3 }
  0xdb   : > { %383 = vst [vmem:[%s694_s24 + $0xa0] sm:$0xff] %v838_v4  ;;  %v472_v26 = vadd.f32 %v471_v23, %v441_v22 }
  0xdc   : > { %391 = vst [vmem:[%s694_s24 + $0xe0] sm:$0xff] %v851_v19 }
  0xe0   : > { %v285_v13 = vpop.f32.mrf.mxu0  ;;  %v309_v14 = vpop.f32.mrf.mxu1 }
  0xe1   : > { %369 = vst [vmem:[%s694_s24 + $0x30] sm:$0xff] %v285_v13  ;;  %v849_v18 = vpop.f32.mrf.mxu2  ;;  %v442_v25 = vmul.f32 %v285_v13, %v285_v13  ;;  %v401_v27 = vadd.f32 %v400_v24, %v285_v13  ;;  %v859_v34 = vpop.f32.mrf.mxu3  ;;  %v454_v13 = vmul.f32 %v812_v60, %v812_v60 }
  0xe2   : > { %377 = vst [vmem:[%s694_s24 + $0x70] sm:$0xff] %v309_v14  ;;  %v457_v23 = vmul.f32 %v849_v18, %v849_v18 }
  0xe3   : > { %384 = vst [vmem:[%s694_s24 + $0xa8] sm:$0xff] %v849_v18  ;;  %v473_v30 = vadd.f32 %v472_v26, %v442_v25 }
  0xe4   : > { %392 = vst [vmem:[%s694_s24 + $0xe8] sm:$0xff] %v859_v34 }
  0xe8   : > { %v288_v28 = vpop.f32.mrf.mxu0  ;;  %v312_v29 = vpop.f32.mrf.mxu1 }
  0xe9   : > { %370 = vst [vmem:[%s694_s24 + $0x38] sm:$0xff] %v288_v28  ;;  %v402_v31 = vadd.f32 %v401_v27, %v288_v28  ;;  %v443_v32 = vmul.f32 %v288_v28, %v288_v28  ;;  %v333_v33 = vpop.f32.mrf.mxu2  ;;  %v357_v48 = vpop.f32.mrf.mxu3  ;;  %v451_v2 = vmul.f32 %v312_v29, %v312_v29 }
  0xea   : > { %378 = vst [vmem:[%s694_s24 + $0x78] sm:$0xff] %v312_v29  ;;  %v458_v26 = vmul.f32 %v333_v33, %v333_v33 }
  0xeb   : > { %v403_v36 = vadd.f32 %v402_v31, %v782_v50  ;;  %v474_v37 = vadd.f32 %v473_v30, %v443_v32  ;;  %385 = vst [vmem:[%s694_s24 + $0xb0] sm:$0xff] %v333_v33 }
  0xec   : > { %393 = vst [vmem:[%s694_s24 + $0xf0] sm:$0xff] %v357_v48 }
  0xed   : > { %v404_v39 = vadd.f32 %v403_v36, %v787_v52  ;;  %v475_v40 = vadd.f32 %v474_v37, %v444_v35  ;;  %v463_v37 = vmul.f32 %v840_v5, %v840_v5 }
  0xef   : > { %v405_v42 = vadd.f32 %v404_v39, %v796_v55  ;;  %v476_v43 = vadd.f32 %v475_v40, %v445_v38 }
  0xf1   : > { %v477_v45 = vadd.f32 %v476_v43, %v446_v41  ;;  %v406_v46 = vadd.f32 %v405_v42, %v809_v59  ;;  %v336_v47 = vpop.f32.mrf.mxu2  ;;  %v450_v59 = vmul.f32 %v309_v14, %v309_v14  ;;  %v360_v8 = vpop.f32.mrf.mxu3  ;;  %v465_v42 = vmul.f32 %v859_v34, %v859_v34 }
  0xf2   : > { %386 = vst [vmem:[%s694_s24 + $0xb8] sm:$0xff] %v336_v47  ;;  %v459_v27 = vmul.f32 %v336_v47, %v336_v47 }
  0xf3   : > { %v407_v50 = vadd.f32 %v406_v46, %v822_v63  ;;  %v478_v51 = vadd.f32 %v477_v45, %v447_v44  ;;  %394 = vst [vmem:[%s694_s24 + $0xf8] sm:$0xff] %v360_v8  ;;  %v466_v45 = vmul.f32 %v357_v48, %v357_v48  ;;  %v467_v46 = vmul.f32 %v360_v8, %v360_v8 }
  0xf5   : > { %v408_v52 = vadd.f32 %v407_v50, %v835_v3  ;;  %v479_v55 = vadd.f32 %v478_v51, %v448_v49 }
  0xf7   : > { %v480_v58 = vadd.f32 %v479_v55, %v449_v54  ;;  %v409_v62 = vadd.f32 %v408_v52, %v309_v14 }
  0xf9   : > { %v481_v6 = vadd.f32 %v480_v58, %v450_v59  ;;  %v410_v7 = vadd.f32 %v409_v62, %v312_v29 }
  0xfb   : > { %v411_v63 = vadd.f32 %v410_v7, %v790_v53  ;;  %v482_v10 = vadd.f32 %v481_v6, %v451_v2  ;;  %v456_v53 = vmul.f32 %v838_v4, %v838_v4 }
  0xfd   : > { %v412_v3 = vadd.f32 %v411_v63, %v799_v56  ;;  %v483_v12 = vadd.f32 %v482_v10, %v452_v9 }
  0xff   : > { %v413_v14 = vadd.f32 %v412_v3, %v812_v60  ;;  %v484_v15 = vadd.f32 %v483_v12, %v453_v11 }
 0x101   : > { %v485_v17 = vadd.f32 %v484_v15, %v454_v13  ;;  %v414_v20 = vadd.f32 %v413_v14, %v825_v0  ;;  %v460_v0 = vmul.f32 %v801_v57, %v801_v57 }
 0x103   : > { %v415_v21 = vadd.f32 %v414_v20, %v838_v4  ;;  %v486_v22 = vadd.f32 %v485_v17, %v455_v16  ;;  %v461_v4 = vmul.f32 %v814_v61, %v814_v61 }
 0x105   : > { %v416_v56 = vadd.f32 %v415_v21, %v849_v18  ;;  %v487_v24 = vadd.f32 %v486_v22, %v456_v53  ;;  %v462_v18 = vmul.f32 %v827_v1, %v827_v1 }
 0x107   : > { %v488_v60 = vadd.f32 %v487_v24, %v457_v23  ;;  %v417_v25 = vadd.f32 %v416_v56, %v333_v33 }
 0x109   : > { %v489_v28 = vadd.f32 %v488_v60, %v458_v26  ;;  %v418_v29 = vadd.f32 %v417_v25, %v336_v47 }
 0x10b   : > { %v419_v30 = vadd.f32 %v418_v29, %v801_v57  ;;  %v490_v31 = vadd.f32 %v489_v28, %v459_v27  ;;  %v464_v57 = vmul.f32 %v851_v19, %v851_v19 }
 0x10d   : > { %v420_v32 = vadd.f32 %v419_v30, %v814_v61  ;;  %v491_v35 = vadd.f32 %v490_v31, %v460_v0 }
 0x10f   : > { %v421_v33 = vadd.f32 %v420_v32, %v827_v1  ;;  %v492_v36 = vadd.f32 %v491_v35, %v461_v4 }
 0x111   : > { %v493_v38 = vadd.f32 %v492_v36, %v462_v18  ;;  %v422_v39 = vadd.f32 %v421_v33, %v840_v5 }
 0x113   : > { %v423_v40 = vadd.f32 %v422_v39, %v851_v19  ;;  %v494_v41 = vadd.f32 %v493_v38, %v463_v37 }
 0x115   : > { %v424_v61 = vadd.f32 %v423_v40, %v859_v34  ;;  %v495_v43 = vadd.f32 %v494_v41, %v464_v57  ;;  %v395_v34 = vld [vmem:[%s940_s3] sm:$0x1] }
 0x117   : > { %v496_v1 = vadd.f32 %v495_v43, %v465_v42  ;;  %v425_v44 = vadd.f32 %v424_v61, %v357_v48  ;;  %v435_v48 = vld [vmem:[%s941_s4] sm:$0x1] }
 0x119   : > { %v497_v47 = vadd.f32 %v496_v1, %v466_v45  ;;  %v426_v49 = vadd.f32 %v425_v44, %v360_v8 }
 0x11b   : > { %v427_v50 = vrot.slane %v426_v49, 4  ;;  %v498_v5 = vadd.f32 %v497_v47, %v467_v46 }
 0x11d   : > { %v428_v51 = vadd.f32 %v427_v50, %v426_v49  ;;  %v499_v52 = vrot.slane %v498_v5, 4 }
 0x11f   : > { %v429_v54 = vrot.slane %v428_v51, 2  ;;  %v500_v55 = vadd.f32 %v499_v52, %v498_v5 }
 0x121   : > { %v430_v19 = vadd.f32 %v429_v54, %v428_v51  ;;  %v501_v58 = vrot.slane %v500_v55, 2 }
 0x123   : > { %v431_v62 = vrot.slane %v430_v19, 1  ;;  %v502_v59 = vadd.f32 %v501_v58, %v500_v55 }
 0x125   : > { %v432_v2 = vadd.f32 %v431_v62, %v430_v19  ;;  %v503_v6 = vrot.slane %v502_v59, 1 }
 0x127   : > { %v433_v7 = vadd.f32 %v432_v2, %v395_v34  ;;  %v504_v8 = vadd.f32 %v503_v6, %v502_v59 }
 0x129   : > { %434 = vst [vmem:[%s940_s3] sm:$0x1] %v433_v7  ;;  %v505_v9 = vadd.f32 %v504_v8, %v435_v48 }
 0x12b   : > { %506 = vst [vmem:[%s941_s4] sm:$0x1] %v505_v9 }
 0x12c PF: > { %s15_s15 = sadd.s32 1, %s650_s15  }
 0x12d   : > { %p12_p5 = scmp.ge.s32.totalorder %s15_s15, 4  }
 0x12f   :  { %14 = sbr.rel (!%p12_p5) target bundleno = 1 (0x1), region = 78 }

// kernel: conv_block_forward.3
= control target key start
LH: loop header
LB: loop body
LE: loop exit
PB: predicated region body
PF: predicated region fallthrough
CT: control target
= control target key end

     0   :  { %s531_s18 = smov 0   ;;  %s703_s0 = inlined_call_operand.vmem [shape: f32[512,128], index: 0, kind: input, shape index: {}]   ;;  %s704_s1 = inlined_call_operand.vmem [shape: f32[1,128], index: 1, kind: input, shape index: {}]   ;;  %s705_s2 = inlined_call_operand.vmem [shape: f32[1,128], index: 2, kind: input, shape index: {}]   ;;  %s706_s3 = inlined_call_operand.vmem [shape: f32[1,128], index: 3, kind: input, shape index: {}]   ;;  %s707_s4 = inlined_call_operand.vmem [shape: f32[1,128], index: 4, kind: input, shape index: {}]   ;;  %s708_s5 = inlined_call_operand.vmem [shape: f32[512,128], index: 5, kind: output, shape index: {}]  }
   0x1 LB: > { %s472_s19 = sadd.s32 4294967295, %s499_s18   ;;  %p476_p0 = scmp.ge.s32.totalorder %s499_s18, 1  ;;  %s499_s18 = sphi %s531_s18, %s15_s18  }
   0x2   : > { %p188_p1 = scmp.lt.s32.totalorder %s499_s18, 3 }
   0x4   : > { %p189_p2 = pnand %p476_p0, %p188_p1 }
   0x5   : > { %s477_s24 = sshll.u32 (!%p189_p2), %s472_s19, 5 }
   0x6   : > { %192 = sbr.rel (%p189_p2) target bundleno = 82 (0x52), region = 40  ;;  %p217_p3 = scmp.lt.s32.totalorder (!%p189_p2), %s477_s24, 63 }
   0xb   : > { %v228_v0 = vld [vmem:[%s704_s1] sm:$0x1]  ;;  %s710_s24 = smov (!%p217_p3, %s477_s24), 63 }
   0xc   : > { %v230_v1 = vld [vmem:[%s705_s2] sm:$0x1]  ;;  %v229_v2 = vmul.f32 0.001953125, %v228_v0  ;;  %s478_s25 = sshll.u32 %s710_s24, 3 }
   0xd   : > { %v231_v3 = vmul.f32 0.001953125, %v230_v1  ;;  %v245_v13 = vld [vmem:[%s706_s3] sm:$0x1]  ;;  %s556_s30 = scalar_lea.vmem %s703_s0, %s478_s25  ;;  %s595_s10 = scalar_lea.vmem %s708_s5, %s478_s25 }
   0xe   : > { %v232_v4 = vmul.f32 %v229_v2, %v229_v2  ;;  %v247_v16 = vld [vmem:[%s707_s4] sm:$0x1]  ;;  %v251_v18 = vld [vmem:[%s556_s30 + $0x8] sm:$0xff]  ;;  %v252_v19 = vld [vmem:[%s556_s30 + $0x10] sm:$0xff] }
   0xf   : > { %v250_v17 = vld [vmem:[%s556_s30] sm:$0xff]  ;;  %v253_v22 = vld [vmem:[%s556_s30 + $0x18] sm:$0xff]  ;;  %v255_v24 = vld [vmem:[%s556_s30 + $0x28] sm:$0xff] }
  0x10   : > { %v233_v5 = vsub.f32 %v231_v3, %v232_v4  ;;  %v254_v23 = vld [vmem:[%s556_s30 + $0x20] sm:$0xff]  ;;  %v256_v25 = vld [vmem:[%s556_s30 + $0x30] sm:$0xff]  ;;  %v257_v30 = vld [vmem:[%s556_s30 + $0x38] sm:$0xff] }
  0x11   : > { %v258_v31 = vld [vmem:[%s556_s30 + $0x40] sm:$0xff]  ;;  %v259_v37 = vld [vmem:[%s556_s30 + $0x48] sm:$0xff]  ;;  %v260_v38 = vld [vmem:[%s556_s30 + $0x50] sm:$0xff] }
  0x12   : > { %v234_v6 = vadd.f32 1e-05, %v233_v5  ;;  %v261_v45 = vld [vmem:[%s556_s30 + $0x58] sm:$0xff]  ;;  %v262_v50 = vld [vmem:[%s556_s30 + $0x60] sm:$0xff]  ;;  %v263_v55 = vld [vmem:[%s556_s30 + $0x68] sm:$0xff] }
  0x13   : > { %v264_v59 = vld [vmem:[%s556_s30 + $0x70] sm:$0xff]  ;;  %v265_v63 = vld [vmem:[%s556_s30 + $0x78] sm:$0xff]  ;;  %v266_v3 = vld [vmem:[%s556_s30 + $0x80] sm:$0xff] }
  0x14   : > { %491 = vrsqrt.f32 %v234_v6  ;;  %vm241_vm0 = vweird.f32 %v234_v6 }
  0x1a   : > { %v492_v7 = vpop.eup %491 }
  0x1b   : > { %v236_v8 = vmul.f32 %v492_v7, %v234_v6  ;;  %vm242_vm1 = vweird.f32 %v492_v7 }
  0x1c   : > { %vm243_vm2 = vmor %vm241_vm0, %vm242_vm1 }
  0x1d   : > { %v237_v9 = vmul.f32 %v492_v7, %v236_v8 }
  0x1f   : > { %v238_v10 = vmul.f32 0.5, %v237_v9 }
  0x21   : > { %v239_v11 = vsub.f32 1.5, %v238_v10 }
  0x23   : > { %v240_v12 = vmul.f32 %v492_v7, %v239_v11  ;;  %v268_v11 = vld [vmem:[%s556_s30 + $0x90] sm:$0xff] }
  0x25   : > { %v244_v14 = vsel %vm243_vm2, %v492_v7, %v240_v12  ;;  %v267_v7 = vld [vmem:[%s556_s30 + $0x88] sm:$0xff] }
  0x26   : > { %v246_v15 = vmul.f32 %v245_v13, %v244_v14 }
  0x28   : > { %v248_v20 = vmul.f32 %v246_v15, %v229_v2  ;;  %v564_v21 = vperm.slane %v246_v15, 0  ;;  %v269_v15 = vld [vmem:[%s556_s30 + $0x98] sm:$0xff] }
  0x2a   : > { %v249_v26 = vsub.f32 %v247_v16, %v248_v20  ;;  %v285_v27 = vmul.f32 %v564_v21, %v250_v17  ;;  %v286_v28 = vmul.f32 %v564_v21, %v251_v18  ;;  %v287_v29 = vmul.f32 %v564_v21, %v252_v19  ;;  %v270_v19 = vld [vmem:[%s556_s30 + $0xa0] sm:$0xff] }
  0x2b   : > { %v288_v32 = vmul.f32 %v564_v21, %v253_v22  ;;  %v289_v33 = vmul.f32 %v564_v21, %v254_v23  ;;  %v290_v34 = vmul.f32 %v564_v21, %v255_v24  ;;  %v291_v36 = vmul.f32 %v564_v21, %v256_v25  ;;  %v271_v24 = vld [vmem:[%s556_s30 + $0xa8] sm:$0xff] }
  0x2c   : > { %v578_v35 = vperm.slane %v249_v26, 0  ;;  %v292_v39 = vmul.f32 %v564_v21, %v257_v30  ;;  %v293_v40 = vmul.f32 %v564_v21, %v258_v31  ;;  %v294_v48 = vmul.f32 %v564_v21, %v259_v37  ;;  %v274_v37 = vld [vmem:[%s556_s30 + $0xc0] sm:$0xff] }
  0x2d   : > { %v295_v49 = vmul.f32 %v564_v21, %v260_v38  ;;  %v296_v58 = vmul.f32 %v564_v21, %v261_v45  ;;  %v297_v62 = vmul.f32 %v564_v21, %v262_v50  ;;  %v298_v2 = vmul.f32 %v564_v21, %v263_v55  ;;  %v276_v45 = vld [vmem:[%s556_s30 + $0xd0] sm:$0xff] }
  0x2e   : > { %v320_v41 = vadd.f32 %v578_v35, %v285_v27  ;;  %v321_v42 = vadd.f32 %v578_v35, %v286_v28  ;;  %v322_v43 = vadd.f32 %v578_v35, %v287_v29  ;;  %v323_v44 = vadd.f32 %v578_v35, %v288_v32  ;;  %v272_v28 = vld [vmem:[%s556_s30 + $0xb0] sm:$0xff]  ;;  %v273_v32 = vld [vmem:[%s556_s30 + $0xb8] sm:$0xff] }
  0x2f   : > { %v324_v46 = vadd.f32 %v578_v35, %v289_v33  ;;  %v325_v47 = vadd.f32 %v578_v35, %v290_v34  ;;  %v326_v54 = vadd.f32 %v578_v35, %v291_v36  ;;  %v327_v57 = vadd.f32 %v578_v35, %v292_v39 }
  0x30   : > { %v352_v51 = vmax.f32 %v320_v41, 0.0  ;;  %v353_v52 = vmax.f32 %v321_v42, 0.0  ;;  %v354_v53 = vmax.f32 %v322_v43, 0.0  ;;  %v355_v56 = vmax.f32 %v323_v44, 0.0  ;;  %v275_v41 = vld [vmem:[%s556_s30 + $0xc8] sm:$0xff] }
  0x31   : > { %v356_v60 = vmax.f32 %v324_v46, 0.0  ;;  %v328_v61 = vadd.f32 %v578_v35, %v293_v40  ;;  %v357_v0 = vmax.f32 %v325_v47, 0.0  ;;  %v329_v1 = vadd.f32 %v578_v35, %v294_v48 }
  0x32   : > { %384 = vst [vmem:[%s595_s10] sm:$0xff] %v352_v51  ;;  %v358_v4 = vmax.f32 %v326_v54, 0.0  ;;  %v330_v5 = vadd.f32 %v578_v35, %v295_v49  ;;  %v299_v6 = vmul.f32 %v564_v21, %v264_v59  ;;  %v359_v8 = vmax.f32 %v327_v57, 0.0  ;;  %v277_v49 = vld [vmem:[%s556_s30 + $0xd8] sm:$0xff]  ;;  %v279_v57 = vld [vmem:[%s556_s30 + $0xe8] sm:$0xff] }
  0x33   : > { %385 = vst [vmem:[%s595_s10 + $0x8] sm:$0xff] %v353_v52  ;;  %v331_v9 = vadd.f32 %v578_v35, %v296_v58  ;;  %v300_v10 = vmul.f32 %v564_v21, %v265_v63  ;;  %v360_v12 = vmax.f32 %v328_v61, 0.0  ;;  %v332_v13 = vadd.f32 %v578_v35, %v297_v62  ;;  %v280_v61 = vld [vmem:[%s556_s30 + $0xf0] sm:$0xff] }
  0x34   : > { %386 = vst [vmem:[%s595_s10 + $0x10] sm:$0xff] %v354_v53  ;;  %v301_v14 = vmul.f32 %v564_v21, %v266_v3  ;;  %v361_v16 = vmax.f32 %v329_v1, 0.0  ;;  %v333_v17 = vadd.f32 %v578_v35, %v298_v2  ;;  %v302_v18 = vmul.f32 %v564_v21, %v267_v7  ;;  %v278_v53 = vld [vmem:[%s556_s30 + $0xe0] sm:$0xff]  ;;  %v281_v1 = vld [vmem:[%s556_s30 + $0xf8] sm:$0xff] }
  0x35   : > { %387 = vst [vmem:[%s595_s10 + $0x18] sm:$0xff] %v355_v56  ;;  %v362_v20 = vmax.f32 %v330_v5, 0.0  ;;  %v334_v22 = vadd.f32 %v578_v35, %v299_v6  ;;  %v303_v23 = vmul.f32 %v564_v21, %v268_v11  ;;  %v363_v25 = vmax.f32 %v331_v9, 0.0 }
  0x36   : > { %388 = vst [vmem:[%s595_s10 + $0x20] sm:$0xff] %v356_v60  ;;  %v335_v26 = vadd.f32 %v578_v35, %v300_v10  ;;  %v304_v27 = vmul.f32 %v564_v21, %v269_v15  ;;  %v364_v29 = vmax.f32 %v332_v13, 0.0  ;;  %v336_v30 = vadd.f32 %v578_v35, %v301_v14 }
  0x37   : > { %389 = vst [vmem:[%s595_s10 + $0x28] sm:$0xff] %v357_v0  ;;  %v305_v31 = vmul.f32 %v564_v21, %v270_v19  ;;  %v365_v33 = vmax.f32 %v333_v17, 0.0  ;;  %v337_v34 = vadd.f32 %v578_v35, %v302_v18  ;;  %v306_v36 = vmul.f32 %v564_v21, %v271_v24 }
  0x38   : > { %390 = vst [vmem:[%s595_s10 + $0x30] sm:$0xff] %v358_v4  ;;  %v366_v38 = vmax.f32 %v334_v22, 0.0  ;;  %v338_v39 = vadd.f32 %v578_v35, %v303_v23  ;;  %v307_v40 = vmul.f32 %v564_v21, %v272_v28  ;;  %v367_v42 = vmax.f32 %v335_v26, 0.0 }
  0x39   : > { %391 = vst [vmem:[%s595_s10 + $0x38] sm:$0xff] %v359_v8  ;;  %v339_v43 = vadd.f32 %v578_v35, %v304_v27  ;;  %v308_v44 = vmul.f32 %v564_v21, %v273_v32  ;;  %v368_v46 = vmax.f32 %v336_v30, 0.0  ;;  %v340_v47 = vadd.f32 %v578_v35, %v305_v31 }
  0x3a   : > { %392 = vst [vmem:[%s595_s10 + $0x40] sm:$0xff] %v360_v12  ;;  %v309_v48 = vmul.f32 %v564_v21, %v274_v37  ;;  %v369_v50 = vmax.f32 %v337_v34, 0.0  ;;  %v341_v51 = vadd.f32 %v578_v35, %v306_v36  ;;  %v310_v52 = vmul.f32 %v564_v21, %v275_v41 }
  0x3b   : > { %393 = vst [vmem:[%s595_s10 + $0x48] sm:$0xff] %v361_v16  ;;  %v370_v54 = vmax.f32 %v338_v39, 0.0  ;;  %v342_v55 = vadd.f32 %v578_v35, %v307_v40  ;;  %v311_v56 = vmul.f32 %v564_v21, %v276_v45  ;;  %v371_v58 = vmax.f32 %v339_v43, 0.0 }
  0x3c   : > { %394 = vst [vmem:[%s595_s10 + $0x50] sm:$0xff] %v362_v20  ;;  %v343_v59 = vadd.f32 %v578_v35, %v308_v44  ;;  %v312_v60 = vmul.f32 %v564_v21, %v277_v49  ;;  %v372_v62 = vmax.f32 %v340_v47, 0.0  ;;  %v344_v63 = vadd.f32 %v578_v35, %v309_v48 }
  0x3d   : > { %395 = vst [vmem:[%s595_s10 + $0x58] sm:$0xff] %v363_v25  ;;  %v313_v0 = vmul.f32 %v564_v21, %v278_v53  ;;  %v373_v2 = vmax.f32 %v341_v51, 0.0  ;;  %v345_v3 = vadd.f32 %v578_v35, %v310_v52  ;;  %v314_v4 = vmul.f32 %v564_v21, %v279_v57 }
  0x3e   : > { %396 = vst [vmem:[%s595_s10 + $0x60] sm:$0xff] %v364_v29  ;;  %v374_v5 = vmax.f32 %v342_v55, 0.0  ;;  %v346_v6 = vadd.f32 %v578_v35, %v311_v56  ;;  %v315_v7 = vmul.f32 %v564_v21, %v280_v61  ;;  %v375_v8 = vmax.f32 %v343_v59, 0.0 }
  0x3f   : > { %397 = vst [vmem:[%s595_s10 + $0x68] sm:$0xff] %v365_v33  ;;  %v347_v9 = vadd.f32 %v578_v35, %v312_v60  ;;  %v316_v10 = vmul.f32 %v564_v21, %v281_v1  ;;  %v376_v11 = vmax.f32 %v344_v63, 0.0  ;;  %v348_v12 = vadd.f32 %v578_v35, %v313_v0 }
  0x40   : > { %398 = vst [vmem:[%s595_s10 + $0x70] sm:$0xff] %v366_v38  ;;  %v377_v13 = vmax.f32 %v345_v3, 0.0  ;;  %v349_v14 = vadd.f32 %v578_v35, %v314_v4  ;;  %v378_v15 = vmax.f32 %v346_v6, 0.0  ;;  %v350_v16 = vadd.f32 %v578_v35, %v315_v7 }
  0x41   : > { %399 = vst [vmem:[%s595_s10 + $0x78] sm:$0xff] %v367_v42  ;;  %v379_v21 = vmax.f32 %v347_v9, 0.0  ;;  %v351_v17 = vadd.f32 %v578_v35, %v316_v10  ;;  %v380_v18 = vmax.f32 %v348_v12, 0.0 }
  0x42   : > { %400 = vst [vmem:[%s595_s10 + $0x80] sm:$0xff] %v368_v46  ;;  %v381_v19 = vmax.f32 %v349_v14, 0.0  ;;  %v382_v20 = vmax.f32 %v350_v16, 0.0 }
  0x43   : > { %401 = vst [vmem:[%s595_s10 + $0x88] sm:$0xff] %v369_v50  ;;  %v383_v22 = vmax.f32 %v351_v17, 0.0 }
  0x44   : > { %402 = vst [vmem:[%s595_s10 + $0x90] sm:$0xff] %v370_v54 }
  0x45   : > { %403 = vst [vmem:[%s595_s10 + $0x98] sm:$0xff] %v371_v58 }
  0x46   : > { %404 = vst [vmem:[%s595_s10 + $0xa0] sm:$0xff] %v372_v62 }
  0x47   : > { %405 = vst [vmem:[%s595_s10 + $0xa8] sm:$0xff] %v373_v2 }
  0x48   : > { %406 = vst [vmem:[%s595_s10 + $0xb0] sm:$0xff] %v374_v5 }
  0x49   : > { %407 = vst [vmem:[%s595_s10 + $0xb8] sm:$0xff] %v375_v8 }
  0x4a   : > { %408 = vst [vmem:[%s595_s10 + $0xc0] sm:$0xff] %v376_v11 }
  0x4b   : > { %409 = vst [vmem:[%s595_s10 + $0xc8] sm:$0xff] %v377_v13 }
  0x4c   : > { %410 = vst [vmem:[%s595_s10 + $0xd0] sm:$0xff] %v378_v15 }
  0x4d   : > { %411 = vst [vmem:[%s595_s10 + $0xd8] sm:$0xff] %v379_v21 }
  0x4e   : > { %412 = vst [vmem:[%s595_s10 + $0xe0] sm:$0xff] %v380_v18 }
  0x4f   : > { %413 = vst [vmem:[%s595_s10 + $0xe8] sm:$0xff] %v381_v19 }
  0x50   : > { %414 = vst [vmem:[%s595_s10 + $0xf0] sm:$0xff] %v382_v20 }
  0x51   : > { %415 = vst [vmem:[%s595_s10 + $0xf8] sm:$0xff] %v383_v22 }
  0x52 PF: > { %s15_s18 = sadd.s32 1, %s499_s18  }
  0x53   : > { %p12_p4 = scmp.ge.s32.totalorder %s15_s18, 4  }
  0x55   :  { %14 = sbr.rel (!%p12_p4) target bundleno = 1 (0x1), region = 70 }

</bundles_post_ra>
